<compile_context>
chip_gen: v5e
topology: v5e:2x2
jax: 0.10.0
libtpu: 0.0.40
codegen_flags: <defaults>
</compile_context>

<pallas_src>
import math

import jax
import jax.numpy as jnp
from jax import lax
from jax.experimental import pallas as pl
from jax.experimental.pallas import tpu as pltpu


_VMEM_LIMIT = 32 * 1024 * 1024  # explicit, safe on v5e/v6e/v7x (v7x has 64 MiB physical)


def _row_tile(n_rows, n_cols, itemsize, budget_bytes=8 * 1024 * 1024):
    """Largest row tile (multiple of 8, capped at 512) whose double-buffered
    block stays well inside the VMEM budget (sized for v7x's smaller VMEM)."""
    t = budget_bytes // max(1, 2 * n_cols * itemsize)
    t = min(t, 512, n_rows)
    t = max(8, (t // 8) * 8)
    if n_rows <= t:
        return n_rows          # full extent is always a legal block dim
    return t


# ---------------------------------------------------------------------------
# Kernel 1: projection score + tanh normalization (tiled over N)
# ---------------------------------------------------------------------------
def _score_kernel(x_ref, w_ref, s_ref):
    w = w_ref[...].astype(jnp.float32)                      # (1, C), resident
    inv_norm = lax.rsqrt(jnp.sum(w * w))                    # 1/||w||_2 (EUP rsqrt)
    x = x_ref[...].astype(jnp.float32)                      # upcast in-kernel
    s = jnp.sum(x * w, axis=-1, keepdims=True)              # (TM, 1)
    s_ref[...] = jnp.tanh(s * inv_norm)                     # nonlinearity = tanh


def compute_score(x, weight):
    N, C = x.shape
    tm = _row_tile(N, C, x.dtype.itemsize)
    return pl.pallas_call(
        _score_kernel,
        out_shape=jax.ShapeDtypeStruct((N, 1), jnp.float32),
        grid_spec=pltpu.PrefetchScalarGridSpec(
            num_scalar_prefetch=0,
            grid=(pl.cdiv(N, tm),),
            in_specs=[
                pl.BlockSpec((tm, C), lambda i: (i, 0)),     # x tile (native dtype DMA)
                pl.BlockSpec((1, C), lambda i: (0, 0)),      # weight stays resident
            ],
            out_specs=pl.BlockSpec((tm, 1), lambda i: (i, 0)),
        ),
        compiler_params=pltpu.CompilerParams(
            dimension_semantics=("parallel",),               # shards across v7x's 2 TCs
            vmem_limit_bytes=_VMEM_LIMIT),
    )(x, weight.astype(jnp.float32))


# ---------------------------------------------------------------------------
# Kernel 2: x[perm] * score[perm] * multiplier  as one-hot MXU matmul
#           (k axis parallel, N axis is the reduction with f32 accumulator)
# ---------------------------------------------------------------------------
def _gather_matmul_kernel(perm_ref, s_ref, x_ref, o_ref, acc_ref):
    j = pl.program_id(1)

    @pl.when(j == 0)
    def _():
        acc_ref[...] = jnp.zeros_like(acc_ref)

    tk = perm_ref.shape[0]
    tn = x_ref.shape[0]
    base = j * tn
    cols = lax.broadcasted_iota(jnp.int32, (tk, tn), 1) + base
    # score-scaled one-hot (multiplier already folded into s); scale fused into
    # the selection so no extra full-width multiply is needed afterwards.
    onehot = jnp.where(cols == perm_ref[...], s_ref[...], jnp.float32(0.0))
    acc_ref[...] += jnp.dot(onehot, x_ref[...].astype(jnp.float32),
                            preferred_element_type=jnp.float32)

    @pl.when(j == pl.num_programs(1) - 1)
    def _():
        o_ref[...] = acc_ref[...].astype(o_ref.dtype)


def gather_and_scale(x, score_flat, perm, multiplier):
    N, C = x.shape
    k = perm.shape[0]
    # Pre-gather the k scores (tiny) and fold the multiplier in plain JAX.
    s_perm = (score_flat[perm].astype(jnp.float32) * jnp.float32(multiplier)).reshape(k, 1)
    perm2 = perm.astype(jnp.int32).reshape(k, 1)

    tk = k if k <= 128 else 128                              # MXU-friendly row tile
    tn = _row_tile(N, C, x.dtype.itemsize)                   # reduction tile over N

    return pl.pallas_call(
        _gather_matmul_kernel,
        out_shape=jax.ShapeDtypeStruct((k, C), x.dtype),
        grid_spec=pltpu.PrefetchScalarGridSpec(
            num_scalar_prefetch=0,
            grid=(pl.cdiv(k, tk), pl.cdiv(N, tn)),
            in_specs=[
                pl.BlockSpec((tk, 1), lambda i, j: (i, 0)),  # perm indices
                pl.BlockSpec((tk, 1), lambda i, j: (i, 0)),  # pre-gathered scores
                pl.BlockSpec((tn, C), lambda i, j: (j, 0)),  # x tile (native dtype DMA)
            ],
            out_specs=pl.BlockSpec((tk, C), lambda i, j: (i, 0)),
            scratch_shapes=[pltpu.VMEM((tk, C), jnp.float32)],
        ),
        compiler_params=pltpu.CompilerParams(
            dimension_semantics=("parallel", "arbitrary"),
            vmem_limit_bytes=_VMEM_LIMIT),
    )(perm2, s_perm, x)


# ---------------------------------------------------------------------------
# Glue: edge filtering / remapping (static-shape version of filter_adj)
# ---------------------------------------------------------------------------
def filter_adj(edge_index, edge_attr, perm, num_nodes):
    # TODO(synk): true filter_adj compacts the edge list (dynamic output shape);
    # with static shapes we keep E edges and mark removed edges with -1.
    k = perm.shape[0]
    node_map = jnp.full((num_nodes,), -1, dtype=jnp.int32)
    node_map = node_map.at[perm].set(jnp.arange(k, dtype=jnp.int32))
    new_row = node_map[edge_index[0]]
    new_col = node_map[edge_index[1]]
    mask = (new_row >= 0) & (new_col >= 0)
    new_edge_index = jnp.stack(
        [jnp.where(mask, new_row, -1), jnp.where(mask, new_col, -1)]
    )
    new_edge_attr = None if edge_attr is None else jnp.where(mask[:, None], edge_attr, 0)
    return new_edge_index, new_edge_attr


# ---------------------------------------------------------------------------
# Full forward (single-graph case: batch = zeros, min_score = None)
# ---------------------------------------------------------------------------
def topk_pooling_forward(x, edge_index, weight, *, ratio=0.5, multiplier=1.0,
                         edge_attr=None, batch=None):
    N = x.shape[0]
    if batch is None:
        batch = jnp.zeros((N,), dtype=jnp.int32)

    score = compute_score(x, weight)              # (N, 1)  -- Pallas kernel 1
    score_flat = score[:, 0]

    # topk(score, ratio, batch): single graph => top ceil(ratio*N), descending.
    k = int(math.ceil(ratio * N)) if isinstance(ratio, float) else int(ratio)
    _, perm = lax.top_k(score_flat, k)            # descending, like torch.topk

    x_out = gather_and_scale(x, score_flat, perm, multiplier)   # Pallas kernel 2
    batch_out = batch[perm]
    new_ei, new_ea = filter_adj(edge_index, edge_attr, perm, N)
    return x_out, new_ei, new_ea, batch_out, perm, score_flat


if __name__ == "__main__":
    key = jax.random.PRNGKey(0)
    N, C, E = 16, 32, 24                          # num_nodes, in_channels, num_edges
    k1, k2, k3 = jax.random.split(key, 3)

    x = jax.random.normal(k1, (N, C), dtype=jnp.float32)
    # reset_parameters(): uniform_(weight) -> U[0, 1), shape (1, in_channels)
    weight = jax.random.uniform(k2, (1, C), dtype=jnp.float32)
    edge_index = jax.random.randint(k3, (2, E), 0, N, dtype=jnp.int32)

    ratio, multiplier = 0.5, 1.0
    out = topk_pooling_forward(x, edge_index, weight, ratio=ratio, multiplier=multiplier)
    jax.block_until_ready(out)
    x_out, new_ei, new_ea, batch_out, perm, score_flat = out

    # pure-JAX reference check
    score_ref = jnp.tanh(jnp.sum(x * weight, axis=-1) / jnp.linalg.norm(weight))
    kk = int(math.ceil(ratio * N))
    _, perm_ref = lax.top_k(score_ref, kk)
    x_ref = x[perm_ref] * score_ref[perm_ref][:, None] * multiplier
    assert jnp.allclose(score_flat, score_ref, atol=1e-5, rtol=1e-5)
    assert jnp.allclose(x_out, x_ref, atol=1e-5, rtol=1e-5)

    print("KERNEL_OK")
</pallas_src>

<mosaic_0001>
module attributes {stable_mosaic.version = 11 : i64} {
  func.func @_score_kernel(%arg0: i32, %arg1: memref<16x32xf32, #tpu.memory_space<vmem>>, %arg2: memref<1x32xf32, #tpu.memory_space<vmem>>, %arg3: memref<16x1xf32, #tpu.memory_space<vmem>>) attributes {dimension_semantics = [#tpu.dimension_semantics<parallel>], iteration_bounds = array<i64: 1>, scalar_prefetch = 0 : i64, scratch_operands = 0 : i64, tpu.core_type = #tpu.core_type<tc>, window_params = [{transform_indices = @transform_0, window_bounds = array<i64: 16, 32>}, {pipeline_mode = #tpu.pipeline_mode<synchronous>, transform_indices = @transform_1, window_bounds = array<i64: 1, 32>}, {transform_indices = @transform_2, window_bounds = array<i64: 16, 1>}]} {
    %c0 = arith.constant 0 : index
    %c0_0 = arith.constant 0 : index
    %0 = vector.load %arg2[%c0, %c0_0] : memref<1x32xf32, #tpu.memory_space<vmem>>, vector<1x32xf32>
    %1 = arith.mulf %0, %0 : vector<1x32xf32>
    %2 = vector.shape_cast %1 : vector<1x32xf32> to vector<1x1x32xf32>
    %cst = arith.constant dense<0.000000e+00> : vector<1xf32>
    %3 = vector.multi_reduction <add>, %2, %cst [1, 2] : vector<1x1x32xf32> to vector<1xf32>
    %4 = vector.shape_cast %3 : vector<1xf32> to vector<1x1x1xf32>
    %5 = vector.extract %4[0, 0, 0] : f32 from vector<1x1x1xf32>
    %6 = math.rsqrt %5 : f32
    %c0_1 = arith.constant 0 : index
    %c0_2 = arith.constant 0 : index
    %7 = vector.load %arg1[%c0_1, %c0_2] : memref<16x32xf32, #tpu.memory_space<vmem>>, vector<16x32xf32>
    %8 = vector.broadcast %0 : vector<1x32xf32> to vector<16x32xf32>
    %9 = arith.mulf %7, %8 : vector<16x32xf32>
    %cst_3 = arith.constant dense<0.000000e+00> : vector<16xf32>
    %10 = vector.multi_reduction <add>, %9, %cst_3 [1] : vector<16x32xf32> to vector<16xf32>
    %11 = vector.shape_cast %10 : vector<16xf32> to vector<16x1xf32>
    %12 = vector.broadcast %6 : f32 to vector<16x1xf32>
    %13 = arith.mulf %11, %12 : vector<16x1xf32>
    %14 = math.tanh %13 : vector<16x1xf32>
    %c0_4 = arith.constant 0 : index
    %c0_5 = arith.constant 0 : index
    %15 = vector.load %arg3[%c0_4, %c0_5] : memref<16x1xf32, #tpu.memory_space<vmem>>, vector<16x1xf32>
    tpu.vector_store %arg3[%c0_4, %c0_5], %14 {strides = array<i32>} : memref<16x1xf32, #tpu.memory_space<vmem>>, vector<16x1xf32>,
    return
  }
  func.func @transform_0(%arg0: i32) -> (i32, i32) {
    %c0_i32 = arith.constant 0 : i32
    %c0_i32_0 = arith.constant 0 : i32
    return %arg0, %c0_i32 : i32, i32
  }
  func.func @transform_1(%arg0: i32) -> (i32, i32) {
    %c0_i32 = arith.constant 0 : i32
    %c0_i32_0 = arith.constant 0 : i32
    %c0_i32_1 = arith.constant 0 : i32
    return %c0_i32, %c0_i32_0 : i32, i32
  }
  func.func @transform_2(%arg0: i32) -> (i32, i32) {
    %c0_i32 = arith.constant 0 : i32
    %c0_i32_0 = arith.constant 0 : i32
    return %arg0, %c0_i32 : i32, i32
  }
}

</mosaic_0001>

<bundles_post_ra>
// kernel: tpu_custom_call.1
= control target key start
LH: loop header
LB: loop body
LE: loop exit
PB: predicated region body
PF: predicated region fallthrough
CT: control target
= control target key end

     0   :  { %7 = vsyncpa [#allocation3], 0  ;;  %s192_s0 = inlined_call_operand.hbm [shape: f32[16,32], index: 0, kind: input, shape index: {}]   ;;  %s193_s1 = inlined_call_operand.hbm [shape: f32[1,32], index: 1, kind: input, shape index: {}]   ;;  %s194_s2 = inlined_call_operand.vmem [shape: f32[16,1], index: 2, kind: output, shape index: {}]  }
   0x1   :  { %s13_s11 = sshll.u32 %s192_s0, 4  ;;  %s14_s11 = int_to_ptr.hbm [resolvable:$true] %s13_s11 }
   0x2   :  { %8 = vsyncpa [#allocation5], 0  ;;  %s161_s12 = smov [#allocation2]   ;;  %s27_s16 = sshll.u32 %s193_s1, 4  ;;  %s28_s16 = int_to_ptr.hbm [resolvable:$true] %s27_s16 }
   0x3   :  { %s15_s13 = sshll.u32 %s161_s12, 4  ;;  %s162_s17 = smov 128   ;;  %s16_s13 = int_to_ptr.vmem [resolvable:$true] %s15_s13 }
   0x4   :  { %s163_s18 = smov 8   ;;  %s164_s19 = smov [#allocation4]  }
   0x5   :  { %21 = dma.hbm_to_vmem [thread:$0]  %s14_s11, 256, %s16_s13, [#allocation3], %s162_s17, %s162_s17, %s163_s18  }
   0x6   :  { %s29_s20 = sshll.u32 %s164_s19, 4  ;;  %s30_s20 = int_to_ptr.vmem [resolvable:$true] %s29_s20 }
   0x7   :  { %32 = dma.hbm_to_vmem [thread:$0]  %s28_s16, 16, %s30_s20, [#allocation5]  }
   0x8   :  { %157 = dma.done.wait [#allocation3], 256  }
   0x9   :  { %158 = vsyncadd [#allocation3], 4294967040 }
   0xa   :  { %159 = dma.done.wait [#allocation5], 16  }
   0xb   :  { %160 = vsyncadd [#allocation5], 4294967280  ;;  %v41_v0 = vld [vmem:[#allocation4] sm:$0x1]  ;;  %vm43_vm0 = vcmask 253952   ;;  %v67_v4 = vld [vmem:[#allocation2 + $0x8] sm:$0xff] }
   0xc   :  { %v42_v1 = vmul.f32 %v41_v0, %v41_v0  ;;  %v102_v3 = vld [vmem:[#allocation4] ss:$0 sm:$0xff]  ;;  %vm73_vm1 = vcmask 261120   ;;  %v66_v5 = vld [vmem:[#allocation2] sm:$0xff]  ;;  %vm85_vm5 = vcmask 7168  }
   0xd   :  { %v72_v6 = vmul.f32 %v102_v3, %v67_v4  ;;  %v71_v7 = vmul.f32 %v102_v3, %v66_v5 }
   0xe   :  { %v44_v2 = vsel %vm43_vm0, %v42_v1, 0.0 }
   0xf   :  { %45 = vadd.xlane.f32.xlu0 %v44_v2  ;;  %v77_v8 = vsel %vm73_vm1, %v72_v6, 0.0  ;;  %v74_v9 = vsel %vm73_vm1, %v71_v7, 0.0 }
  0x10   :  { %78 = vadd.xlane.f32.xlu1 %v77_v8 }
  0x17   :  { %75 = vadd.xlane.f32.xlu0 %v74_v9 }
  0x82   :  { %v46_v10 = vpop.xlane.xlu0 %45 }
  0x83   :  { %v47_v11 = vrot.slane %v46_v10, 4  ;;  %v79_v25 = vpop.xlane.xlu1 %78 }
  0x85   :  { %v48_v12 = vadd.f32 %v47_v11, %v46_v10 }
  0x87   :  { %v49_v13 = vrot.slane %v48_v12, 2 }
  0x89   :  { %v50_v14 = vadd.f32 %v49_v13, %v48_v12 }
  0x8a   :  { %v76_v26 = vpop.xlane.xlu0 %75 }
  0x8b   :  { %v51_v15 = vrot.slane %v50_v14, 1 }
  0x8d   :  { %v52_v16 = vadd.f32 %v51_v15, %v50_v14 }
  0x8f   :  { %94 = vpush %v52_v16 }
  0xc0   :  { %s95_s0 = spop %94 }
  0xc1   :  { %v54_v17 = vstv %s95_s0 }
  0xc2   :  { %103 = vrsqrt.f32 %v54_v17  ;;  %vm61_vm3 = vweird.f32 %v54_v17 }
  0xc8   :  { %v104_v18 = vpop.eup %103 }
  0xc9   :  { %v56_v19 = vmul.f32 %v104_v18, %v54_v17  ;;  %vm62_vm2 = vweird.f32 %v104_v18 }
  0xca   :  { %vm63_vm4 = vmor %vm61_vm3, %vm62_vm2 }
  0xcb   :  { %v57_v20 = vmul.f32 %v104_v18, %v56_v19 }
  0xcd   :  { %v58_v21 = vmul.f32 0.5, %v57_v20 }
  0xcf   :  { %v59_v22 = vsub.f32 1.5, %v58_v21 }
  0xd1   :  { %v60_v23 = vmul.f32 %v104_v18, %v59_v22 }
  0xd3   :  { %v64_v24 = vsel %vm63_vm4, %v104_v18, %v60_v23 }
  0xd4   :  { %96 = vpush %v64_v24 }
 0x105   :  { %s97_s1 = spop %96 }
 0x106   :  { %v80_v27 = vstv %s97_s1 }
 0x107   :  { %v82_v28 = vmul.f32 %v80_v27, %v79_v25  ;;  %v81_v29 = vmul.f32 %v80_v27, %v76_v26 }
 0x109   :  { %105 = vtanh.f32 %v82_v28 }
 0x10a   :  { %107 = vtanh.f32 %v81_v29 }
 0x10f   :  { %v106_v30 = vpop.eup %105 }
 0x110   :  { %v108_v31 = vpop.eup %107  ;;  %87 = vst.msk [vmem:[%s194_s2 + $0x8] sm:$0xff] %vm85_vm5, %v106_v30 }
 0x111   :  { %86 = vst.msk [vmem:[%s194_s2] sm:$0xff] %vm85_vm5, %v108_v31 }
 0x112   :  { %92 = vsyncpa [#allocation3], 1 }
 0x113   :  { %93 = vsyncpa [#allocation5], 1 }

</bundles_post_ra>
